<compile_context>
chip_gen: v6e
topology: v6e:2x2x1
jax: 0.10.0
libtpu: 0.0.40
codegen_flags: <defaults>
</compile_context>

<pallas_src>
import math

import jax
import jax.numpy as jnp
from jax.experimental import pallas as pl
from jax.experimental.pallas import tpu as pltpu


def _linear_kernel(x_ref, w_ref, o_ref):
    # x_ref: (tm, C), w_ref: (C, d_pad), o_ref: (tm, d_pad)
    o_ref[...] = jnp.dot(
        x_ref[...], w_ref[...], preferred_element_type=jnp.float32
    ).astype(o_ref.dtype)


def _round_up(a, b):
    return ((a + b - 1) // b) * b


def time_feature_embedding(x, weight, *,
                           min_pallas_out_elems=100_000,
                           cast_operands_to_bf16=True):
    """x: (B, L, d_inp) f32, weight: (d_model, d_inp) f32 (PyTorch nn.Linear
    layout).  Returns (B, L, d_model) f32 = x @ weight.T (bias-free)."""
    B, L, C = x.shape
    D = weight.shape[0]
    M = B * L
    d_pad = _round_up(D, 128)

    # Small-problem fallback: pallas_call launch + pipeline prologue overhead
    # plus the D->128 lane padding make the kernel a loss for tiny B*L*D.
    if M * d_pad < min_pallas_out_elems:
        return jnp.einsum("blc,dc->bld", x, weight)

    op_dtype = jnp.bfloat16 if cast_operands_to_bf16 else x.dtype

    # (d_model, d_inp) -> (d_inp, d_model); zero-pad columns to a lane-dense
    # multiple of 128 (exact: padded columns are sliced off below).
    wt = jnp.transpose(weight)                                  # (C, D)
    if d_pad != D:
        wt = jnp.pad(wt, ((0, 0), (0, d_pad - D)))
    wt = wt.astype(op_dtype)

    xm = x.reshape(M, C).astype(op_dtype)

    # Row tile: multiple of 16 (valid for bf16 and f32 sublane tiling),
    # >=4 grid steps when M allows (v7x megacore), capped at 2048 (DMA
    # amortization plateau) and by a VMEM guard on the double-buffered
    # f32 output blocks (~24 MiB budget -> safe under 32 MiB scoped VMEM).
    tm = _round_up(pl.cdiv(M, 4), 16)
    tm = min(tm, 2048)
    tm = min(tm, max(16, (3 * 1024 * 1024 // d_pad) // 16 * 16))
    tm = max(tm, 16)

    grid = (pl.cdiv(M, tm),)   # ragged last block: masked writes, no pad/slice copies

    out = pl.pallas_call(
        _linear_kernel,
        out_shape=jax.ShapeDtypeStruct((M, d_pad), jnp.float32),
        grid=grid,
        in_specs=[
            pl.BlockSpec((tm, C), lambda i: (i, 0)),        # row tile of x
            # Grid-invariant weight: constant index_map -> DMA'd once.
            # (pl.Buffered(1) would shave one tiny VMEM buffer; skipped as a
            #  negligible micro-opt.)
            pl.BlockSpec((C, d_pad), lambda i: (0, 0)),
        ],
        out_specs=pl.BlockSpec((tm, d_pad), lambda i: (i, 0)),
        compiler_params=pltpu.CompilerParams(
            dimension_semantics=("parallel",),
            vmem_limit_bytes=32 * 1024 * 1024,
        ),
    )(xm, wt)

    if d_pad != D:
        out = out[:, :D]
    return out.reshape(B, L, D)


def _reference(x, weight):
    # pure-JAX reference of the PyTorch forward: nn.Linear(d_inp, d_model,
    # bias=False) applied over the last axis.
    return jnp.einsum("blc,dc->bld", x, weight)


if __name__ == "__main__":
    key = jax.random.PRNGKey(0)
    k1, k2, k3, k4 = jax.random.split(key, 4)

    # --- Small shapes implied by the module: freq='h' -> d_inp = 4. ---
    B, L, C, D = 2, 8, 4, 32
    x = jax.random.normal(k1, (B, L, C), jnp.float32)
    bound = 1.0 / math.sqrt(C)     # nn.Linear default kaiming_uniform bound
    w = jax.random.uniform(k2, (D, C), jnp.float32, -bound, bound)

    # Force the Pallas path at this tiny size so the kernel itself is exercised.
    out = jax.block_until_ready(
        time_feature_embedding(x, w, min_pallas_out_elems=0))
    assert out.shape == (B, L, D)
    assert out.dtype == jnp.float32

    # Strict check vs a reference computed with the same bf16 operand cast
    # (matches the MXU math), plus a loose check vs the pure-f32 reference.
    ref_exact = _reference(x.astype(jnp.bfloat16).astype(jnp.float32),
                           w.astype(jnp.bfloat16).astype(jnp.float32))
    ref_f32 = _reference(x, w)
    assert jnp.allclose(out, ref_exact, atol=1e-5, rtol=1e-5), "mismatch (bf16-consistent ref)"
    assert jnp.allclose(out, ref_f32, atol=5e-2, rtol=5e-2), "mismatch (f32 ref)"

    # --- Medium case: default heuristic path, multi-step grid with a ragged
    #     last row block (M = 1040, tm = 272 -> 4 steps, last step 224 rows). ---
    B2, L2, D2 = 4, 260, 512
    x2 = jax.random.normal(k3, (B2, L2, C), jnp.float32)
    w2 = jax.random.uniform(k4, (D2, C), jnp.float32, -bound, bound)
    out2 = jax.block_until_ready(time_feature_embedding(x2, w2))
    ref2 = _reference(x2.astype(jnp.bfloat16).astype(jnp.float32),
                      w2.astype(jnp.bfloat16).astype(jnp.float32))
    assert out2.shape == (B2, L2, D2)
    assert jnp.allclose(out2, ref2, atol=1e-5, rtol=1e-5), "mismatch (medium case)"

    print("KERNEL_OK")
</pallas_src>

<mosaic_0001>
module attributes {stable_mosaic.version = 11 : i64} {
  func.func @_linear_kernel(%arg0: i32, %arg1: memref<16x4xbf16, #tpu.memory_space<vmem>>, %arg2: memref<4x128xbf16, #tpu.memory_space<vmem>>, %arg3: memref<16x128xf32, #tpu.memory_space<vmem>>) attributes {dimension_semantics = [#tpu.dimension_semantics<parallel>], iteration_bounds = array<i64: 1>, scalar_prefetch = 0 : i64, scratch_operands = 0 : i64, tpu.core_type = #tpu.core_type<tc>, window_params = [{transform_indices = @transform_0, window_bounds = array<i64: 16, 4>}, {pipeline_mode = #tpu.pipeline_mode<synchronous>, transform_indices = @transform_1, window_bounds = array<i64: 4, 128>}, {transform_indices = @transform_2, window_bounds = array<i64: 16, 128>}]} {
    %c0 = arith.constant 0 : index
    %c0_0 = arith.constant 0 : index
    %0 = vector.load %arg1[%c0, %c0_0] : memref<16x4xbf16, #tpu.memory_space<vmem>>, vector<16x4xbf16>
    %c0_1 = arith.constant 0 : index
    %c0_2 = arith.constant 0 : index
    %1 = vector.load %arg2[%c0_1, %c0_2] : memref<4x128xbf16, #tpu.memory_space<vmem>>, vector<4x128xbf16>
    %cst = arith.constant dense<0.000000e+00> : vector<16x128xf32>
    %2 = tpu.matmul %0, %1, %cst {dimension_numbers = #tpu.dot_dimension_numbers<[1], [0], [0], [1], [0, 0, 1, 1], [], []>} : vector<16x4xbf16>, vector<4x128xbf16>, vector<16x128xf32> -> vector<16x128xf32>
    %c0_3 = arith.constant 0 : index
    %c0_4 = arith.constant 0 : index
    %3 = vector.load %arg3[%c0_3, %c0_4] : memref<16x128xf32, #tpu.memory_space<vmem>>, vector<16x128xf32>
    tpu.vector_store %arg3[%c0_3, %c0_4], %2 {strides = array<i32>} : memref<16x128xf32, #tpu.memory_space<vmem>>, vector<16x128xf32>,
    return
  }
  func.func @transform_0(%arg0: i32) -> (i32, i32) {
    %c0_i32 = arith.constant 0 : i32
    %c0_i32_0 = arith.constant 0 : i32
    return %arg0, %c0_i32 : i32, i32
  }
  func.func @transform_1(%arg0: i32) -> (i32, i32) {
    %c0_i32 = arith.constant 0 : i32
    %c0_i32_0 = arith.constant 0 : i32
    %c0_i32_1 = arith.constant 0 : i32
    return %c0_i32, %c0_i32_0 : i32, i32
  }
  func.func @transform_2(%arg0: i32) -> (i32, i32) {
    %c0_i32 = arith.constant 0 : i32
    %c0_i32_0 = arith.constant 0 : i32
    return %arg0, %c0_i32 : i32, i32
  }
}

</mosaic_0001>

<bundles_post_ra>
// kernel: tpu_custom_call.1
= control target key start
LH: loop header
LB: loop body
LE: loop exit
PB: predicated region body
PF: predicated region fallthrough
CT: control target
= control target key end

     0   :  { %vm25_vm0 = vcmask 1041408   ;;  %v126_v1 = vmov 0.0   ;;  %vm127_vm1 = vmmov 0   ;;  %vm21_vm2 = vcmask 31744   ;;  %s155_s0 = inlined_call_operand.vmem [shape: bf16[16,4], index: 0, kind: input, shape index: {}]   ;;  %s156_s1 = inlined_call_operand.vmem [shape: bf16[4,128], index: 1, kind: input, shape index: {}]   ;;  %s157_s2 = inlined_call_operand.hbm [shape: f32[16,128], index: 2, kind: output, shape index: {}]  }
   0x1   :  { %v15_v0 = vld [vmem:[%s156_s1] sm:$0x3]  ;;  %92 = vmatprep.subr.bf16.mxu0 %v126_v1  ;;  %94 = vmatprep.mubr.msk.bf16.mxu0 %vm127_vm1, %v126_v1 }
   0x2   :  { %v27_v2 = vsel %vm25_vm0, %v15_v0, 0  ;;  %v103_v3 = vld [vmem:[%s155_s0] sm:$0xff]  }
   0x3   :  { %93 = vmatpush3.bf16.msra.mxu0 %v27_v2 }
   0x4   :  { %7 = vsyncpa [#allocation3], 0  ;;  %s128_s13 = smov [#allocation2]  }
   0x5   :  { %s77_s14 = sshll.u32 %s128_s13, 4  ;;  %s78_s14 = int_to_ptr.vmem [resolvable:$true] %s77_s14 }
   0x6   :  { %95 = vmatmul.mubr.msk.bf16.vlgmr.msra.gmra.mxu0 %vm21_vm2, %v103_v3  ;;  %s104_s1 = scalar_lea.vmem %s78_s14, 256  ;;  %p109_p1 = scmp.lt.s32.totalorder %s78_s14, %s78_s14 }
   0x7   :  { %p105_p0 = scmp.ne.s32.totalorder %s78_s14, %s104_s1  ;;  %p110_p2 = scmp.lt.s32.totalorder %s104_s1, %s104_s1 }
   0x9   :  { %p111_p3 = por %p110_p2, %p109_p1 }
   0xb   :  { %p112_p4 = pnand %p111_p3, %p105_p0 }
  0xc6   :  { %v63_v4 = vpop.f32.mrf.mxu0 }
  0xc7   :  { %70 = vst [vmem:[#allocation2] sm:$0xff] %v63_v4 }
  0xc8   :  { %v96_v5 = vpop.f32.mrf.mxu0 }
  0xca   :  { %v66_v6 = vpop.f32.mrf.mxu0 }
  0xcb   :  { %71 = vst [vmem:[#allocation2 + $0x8] sm:$0xff] %v66_v6 }
  0xcc   :  { %v97_v7 = vpop.f32.mrf.mxu0 }
  0xcd   :  { %115 = shalt.err (!%p112_p4)
}
  0xce   :  { %s129_s0 = smov 128   ;;  %s130_s15 = smov 8  }
  0xcf   :  { %83 = dma.vmem_to_hbm [thread:$0]  %s78_s14, 256, %s157_s2, [#allocation3], %s129_s0, %s129_s0, %s130_s15  }
  0xd0   :  { %124 = dma.done.wait [#allocation3], 256  }
  0xd1   :  { %125 = vsyncadd [#allocation3], 4294967040 }
  0xd2   :  { %87 = vsyncpa [#allocation3], 1 }

</bundles_post_ra>
